<compile_context>
chip_gen: v7x
topology: tpu7x:2x2x1
jax: 0.10.0
libtpu: 0.0.40
codegen_flags: <defaults>
</compile_context>

<pallas_src>
import math

import jax
import jax.numpy as jnp
from jax.experimental import pallas as pl
from jax.experimental.pallas import tpu as pltpu

DEG2RAD = math.pi / 180.0  # Python float -> folded into the trace


def second_harmonic_kernel(p_ref, x_ref, o_ref):
    # packed scalar params in SMEM: [a, b, c, d]
    a = p_ref[0]
    b = p_ref[1]
    c = p_ref[2]
    d = p_ref[3]

    xb = x_ref[...] * DEG2RAD - b            # fused deg2rad + phase shift (VPU)
    cos_xb = jnp.cos(xb)                     # single EUP transcendental
    cos_2xb = 2.0 * cos_xb * cos_xb - 1.0    # double-angle identity (VPU)
    o_ref[...] = jnp.abs(a * cos_xb * (cos_2xb + d)) + c


def _choose_tiles(R, C, target_block_bytes):
    """Pick (row_tile, col_tile) for an (R, C) f32 working array."""
    bytes_per_row = max(C * 4, 1)
    total_bytes = R * bytes_per_row

    # Tiny inputs: one whole-array block (grid-step overhead would dominate
    # any possible 2-TC gain).
    if total_bytes <= (1 << 20) or R <= 8:
        return R, C

    # Very wide rows: even an 8-row full-width block exceeds the block budget,
    # so tile the lane dim in 128-multiples and stream 8 rows at a time.
    if 8 * bytes_per_row > target_block_bytes and C > 128:
        tc = max(128, (target_block_bytes // (8 * 4)) // 128 * 128)
        return 8, tc

    # Normal case: full-width, sublane-aligned row tiles of ~target size.
    tr = max(8, (target_block_bytes // bytes_per_row) // 8 * 8)
    # Guarantee >=2 grid steps so ("parallel", ...) can shard across v7x's
    # two TensorCores.
    tr_two = max(8, (R // 2) // 8 * 8)
    tr = min(tr, tr_two, R)
    return tr, C


def _choose_work_shape(x):
    """Lane-dense 2-D working view of x (elementwise -> reshapes are free)."""
    n = x.size
    last = x.shape[-1] if x.ndim >= 1 else 1
    if x.ndim >= 2 and last % 128 == 0:
        return (n // last, last)
    for lane in (1024, 512, 256, 128):
        if n % lane == 0:
            return (n // lane, lane)
    # Fallback: keep original last dim (full-width block; masked lane stores).
    if x.ndim >= 2:
        return (n // last, last)
    return (1, n)


def second_harmonic(x, params, *, target_block_bytes=6 << 20):
    """x: f32 angles in degrees (any shape). params: (4,) f32 = [a, b, c, d]."""
    x = jnp.asarray(x, jnp.float32)
    params = jnp.asarray(params, jnp.float32).reshape(4)
    orig_shape = x.shape

    R, C = _choose_work_shape(x)
    xw = x.reshape(R, C)

    tr, tc = _choose_tiles(R, C, target_block_bytes)
    grid = (pl.cdiv(R, tr), pl.cdiv(C, tc))

    block_bytes = tr * tc * 4
    # 2x(in) + 2x(out) buffers + headroom, clamped to stay legal on v5e
    # (scoped default 16 MiB) and safe on v7x (64 MiB physical per TC).
    vmem_limit = int(min(48 << 20, max(32 << 20, 4 * block_bytes + (16 << 20))))

    out = pl.pallas_call(
        second_harmonic_kernel,
        out_shape=jax.ShapeDtypeStruct((R, C), jnp.float32),
        grid=grid,
        in_specs=[
            pl.BlockSpec(memory_space=pltpu.MemorySpace.SMEM),   # [a, b, c, d]
            pl.BlockSpec((tr, tc), lambda i, j: (i, j)),
        ],
        out_specs=pl.BlockSpec((tr, tc), lambda i, j: (i, j)),
        compiler_params=pltpu.CompilerParams(
            dimension_semantics=("parallel", "parallel"),
            vmem_limit_bytes=vmem_limit,
        ),
    )(params, xw)

    return out.reshape(orig_shape)


def second_harmonic_ref(x, a, b, c, d):
    """Pure-JAX reference identical to the PyTorch forward."""
    xr = jnp.deg2rad(x)
    return jnp.abs(a * jnp.cos(2.0 * (xr - b)) * jnp.cos(xr - b)
                   + a * d * jnp.cos(xr - b)) + c


if __name__ == "__main__":
    key = jax.random.PRNGKey(0)
    ka, kb, kc, kd, kx = jax.random.split(key, 5)

    # deterministic parameter init mirroring the module's __init__:
    #   a = randn(1)*0.1, b = randn(1), c = randn(1)*0.1, d = randn(1)*0.1
    a = jax.random.normal(ka, (1,), dtype=jnp.float32) * 0.1
    b = jax.random.normal(kb, (1,), dtype=jnp.float32)
    c = jax.random.normal(kc, (1,), dtype=jnp.float32) * 0.1
    d = jax.random.normal(kd, (1,), dtype=jnp.float32) * 0.1
    params = jnp.concatenate([a, b, c, d])

    # primary small case: lane-dense last dim (multiple of 128)
    x = jax.random.uniform(kx, (16, 256), dtype=jnp.float32,
                           minval=0.0, maxval=360.0)
    y = jax.block_until_ready(second_harmonic(x, params))
    y_ref = second_harmonic_ref(x, a, b, c, d)
    assert y.shape == x.shape and y.dtype == jnp.float32
    assert jnp.allclose(y, y_ref, atol=1e-5, rtol=1e-5), "mismatch (16,256)"

    # awkward small shape: exercises the full-width fallback (C not a
    # 128-multiple) with a single whole-array block
    x2 = jax.random.uniform(jax.random.PRNGKey(1), (7, 300),
                            dtype=jnp.float32, minval=-720.0, maxval=720.0)
    y2 = jax.block_until_ready(second_harmonic(x2, params))
    assert jnp.allclose(y2, second_harmonic_ref(x2, a, b, c, d),
                        atol=1e-5, rtol=1e-5), "mismatch (7,300)"

    # medium shape: >=2 grid steps, ragged last row block, masked lane stores
    x3 = jax.random.uniform(jax.random.PRNGKey(2), (1100, 250),
                            dtype=jnp.float32, minval=0.0, maxval=360.0)
    y3 = jax.block_until_ready(second_harmonic(x3, params))
    assert jnp.allclose(y3, second_harmonic_ref(x3, a, b, c, d),
                        atol=1e-5, rtol=1e-5), "mismatch (1100,250)"

    print("KERNEL_OK")
</pallas_src>

<mosaic_0001>
module attributes {stable_mosaic.version = 11 : i64} {
  func.func @second_harmonic_kernel(%arg0: i32, %arg1: i32, %arg2: memref<4xf32, #tpu.memory_space<smem>>, %arg3: memref<16x256xf32, #tpu.memory_space<vmem>>, %arg4: memref<16x256xf32, #tpu.memory_space<vmem>>) attributes {dimension_semantics = [#tpu.dimension_semantics<parallel>, #tpu.dimension_semantics<parallel>], iteration_bounds = array<i64: 1, 1>, scalar_prefetch = 0 : i64, scratch_operands = 0 : i64, tpu.core_type = #tpu.core_type<tc>, window_params = [{transform_indices = @transform_0, window_bounds = array<i64: 4>}, {transform_indices = @transform_1, window_bounds = array<i64: 16, 256>}, {transform_indices = @transform_2, window_bounds = array<i64: 16, 256>}]} {
    %c0 = arith.constant 0 : index
    %0 = memref.load %arg2[%c0] : memref<4xf32, #tpu.memory_space<smem>>
    %c1 = arith.constant 1 : index
    %1 = memref.load %arg2[%c1] : memref<4xf32, #tpu.memory_space<smem>>
    %c2 = arith.constant 2 : index
    %2 = memref.load %arg2[%c2] : memref<4xf32, #tpu.memory_space<smem>>
    %c3 = arith.constant 3 : index
    %3 = memref.load %arg2[%c3] : memref<4xf32, #tpu.memory_space<smem>>
    %c0_0 = arith.constant 0 : index
    %c0_1 = arith.constant 0 : index
    %4 = vector.load %arg3[%c0_0, %c0_1] : memref<16x256xf32, #tpu.memory_space<vmem>>, vector<16x256xf32>
    %cst = arith.constant 0.0174532924 : f32
    %5 = vector.broadcast %cst : f32 to vector<16x256xf32>
    %6 = arith.mulf %4, %5 : vector<16x256xf32>
    %7 = vector.broadcast %1 : f32 to vector<16x256xf32>
    %8 = arith.subf %6, %7 : vector<16x256xf32>
    %9 = math.cos %8 : vector<16x256xf32>
    %cst_2 = arith.constant 2.000000e+00 : f32
    %10 = vector.broadcast %cst_2 : f32 to vector<16x256xf32>
    %11 = arith.mulf %10, %9 : vector<16x256xf32>
    %12 = arith.mulf %11, %9 : vector<16x256xf32>
    %cst_3 = arith.constant 1.000000e+00 : f32
    %13 = vector.broadcast %cst_3 : f32 to vector<16x256xf32>
    %14 = arith.subf %12, %13 : vector<16x256xf32>
    %15 = vector.broadcast %0 : f32 to vector<16x256xf32>
    %16 = arith.mulf %15, %9 : vector<16x256xf32>
    %17 = vector.broadcast %3 : f32 to vector<16x256xf32>
    %18 = arith.addf %14, %17 : vector<16x256xf32>
    %19 = arith.mulf %16, %18 : vector<16x256xf32>
    %20 = math.absf %19 : vector<16x256xf32>
    %21 = vector.broadcast %2 : f32 to vector<16x256xf32>
    %22 = arith.addf %20, %21 : vector<16x256xf32>
    %c0_4 = arith.constant 0 : index
    %c0_5 = arith.constant 0 : index
    %23 = vector.load %arg4[%c0_4, %c0_5] : memref<16x256xf32, #tpu.memory_space<vmem>>, vector<16x256xf32>
    tpu.vector_store %arg4[%c0_4, %c0_5], %22 {strides = array<i32>} : memref<16x256xf32, #tpu.memory_space<vmem>>, vector<16x256xf32>,
    return
  }
  func.func @transform_0(%arg0: i32, %arg1: i32) -> i32 {
    %c0_i32 = arith.constant 0 : i32
    %c0_i32_0 = arith.constant 0 : i32
    return %c0_i32 : i32
  }
  func.func @transform_1(%arg0: i32, %arg1: i32) -> (i32, i32) {
    %c0_i32 = arith.constant 0 : i32
    return %arg0, %arg1 : i32, i32
  }
  func.func @transform_2(%arg0: i32, %arg1: i32) -> (i32, i32) {
    %c0_i32 = arith.constant 0 : i32
    return %arg0, %arg1 : i32, i32
  }
}

</mosaic_0001>

<bundles_post_ra>
// kernel: tpu_custom_call.1
= control target key start
LH: loop header
LB: loop body
LE: loop exit
PB: predicated region body
PF: predicated region fallthrough
CT: control target
= control target key end

     0   :  { %7 = vsyncpa [#allocation5], 0  ;;  %s1048_s0 = inlined_call_operand.hbm [shape: f32[4], index: 0, kind: input, shape index: {}]   ;;  %s1049_s1 = inlined_call_operand.hbm [shape: f32[16,256], index: 1, kind: input, shape index: {}]   ;;  %s1050_s2 = inlined_call_operand.hbm [shape: f32[16,256], index: 2, kind: output, shape index: {}]  }
   0x1   :  { %8 = vsyncpa [#allocation3], 0 }
   0x2   :  { %9 = vsyncpa [#allocation4], 0  ;;  %s589_s11 = scalar_lea.hbm %s1048_s0, 16 }
   0x3   :  { %p590_p0 = scmp.ne.s32.totalorder %s1048_s0, %s589_s11  ;;  %p593_p1 = scmp.lt.u32.totalorder %s589_s11, %s1048_s0 }
   0x5   :  { %p595_p2 = pnand %p593_p1, %p590_p0 }
   0x7   :  { %598 = shalt.err (!%p595_p2)
}
   0x8   :  { %s649_s16 = smov [#allocation2]   ;;  %s650_s19 = smov [#allocation6]  }
   0x9   :  { %17 = dma.hbm_to_smem %s1048_s0, 16, %s649_s16, [#allocation5]  }
   0xa   :  { %s23_s20 = sshll.u32 %s650_s19, 4  ;;  %s599_s23 = scalar_lea.hbm %s1049_s1, 512  ;;  %s24_s20 = int_to_ptr.vmem [resolvable:$true] %s23_s20 }
   0xb   :  { %p600_p3 = scmp.ne.s32.totalorder %s1049_s1, %s599_s23  ;;  %p603_p4 = scmp.lt.u32.totalorder %s599_s23, %s1049_s1 }
   0xd   :  { %p605_p5 = pnand %p603_p4, %p600_p3 }
   0xf   :  { %608 = shalt.err (!%p605_p5)
}
  0x10   :  { %s609_s28 = scalar_lea.vmem %s24_s20, 512  ;;  %p614_p7 = scmp.lt.s32.totalorder %s24_s20, %s24_s20 }
  0x11   :  { %p610_p6 = scmp.ne.s32.totalorder %s24_s20, %s609_s28  ;;  %p615_p8 = scmp.lt.s32.totalorder %s609_s28, %s609_s28 }
  0x13   :  { %p616_p9 = por %p615_p8, %p614_p7 }
  0x15   :  { %p617_p10 = pnand %p616_p9, %p610_p6 }
  0x17   :  { %620 = shalt.err (!%p617_p10)
}
  0x18   :  { %s651_s0 = smov 256   ;;  %s652_s29 = smov 16  }
  0x19   :  { %29 = dma.hbm_to_vmem [thread:$0]  %s1049_s1, 512, %s24_s20, [#allocation3], %s651_s0, %s651_s0, %s652_s29  }
  0x1a   :  { %643 = dma.done.wait [#allocation5], 16  }
  0x1b   :  { %644 = vsyncadd [#allocation5], 4294967280 }
  0x1c   :  { %645 = dma.done.wait [#allocation3], 512  }
  0x1d   :  { %646 = vsyncadd [#allocation3], 4294966784 }
  0x1e   :  { %36 = sfence }
  0x1f   :  { %s523_s4 = sld [smem:[#allocation2 + $0x1]]  ;;  %v41_v0 = vld [vmem:[#allocation6] sm:$0xff]  ;;  %v42_v1 = vld [vmem:[#allocation6 + $0x8] sm:$0xff]  ;;  %v43_v2 = vld [vmem:[#allocation6 + $0x10] sm:$0xff]  ;;  %v653_v40 = vmov 683565275  }
  0x20   :  { %v45_v3 = vmul.f32 0.017453292, %v41_v0  ;;  %v46_v4 = vmul.f32 0.017453292, %v42_v1  ;;  %v47_v5 = vmul.f32 0.017453292, %v43_v2 }
  0x21   :  { %v44_v14 = vld [vmem:[#allocation6 + $0x18] sm:$0xff]  ;;  %v654_v42 = vmov 2475754826   ;;  %v655_v44 = vmov 2131351028   ;;  %s936_s1 = sld [smem:[#allocation2]] }
  0x22   :  { %v48_v21 = vmul.f32 0.017453292, %v44_v14  ;;  %v656_v46 = vmov 2102212464   ;;  %v657_v48 = vmov 920167782  }
  0x23   :  { %v658_v56 = vmov 1326507024   ;;  %s961_s5 = sld [smem:[#allocation2 + $0x3]]  ;;  %s983_s6 = sld [smem:[#allocation2 + $0x2]] }
  0x24   :  { %s659_s7 = smov [#allocation7]  }
  0x25   :  { %v49_v6 = vstv %s523_s4  ;;  %s510_s8 = sshll.u32 %s659_s7, 4  ;;  %s511_s8 = int_to_ptr.vmem [resolvable:$true] %s510_s8 }
  0x26   :  { %v702_v7 = vsub.f32 %v45_v3, %v49_v6  ;;  %v704_v8 = vsub.f32 %v46_v4, %v49_v6  ;;  %v706_v9 = vsub.f32 %v47_v5, %v49_v6  ;;  %v717_v29 = vsub.f32 %v48_v21, %v49_v6  ;;  %s621_s9 = scalar_lea.vmem %s511_s8, 512  ;;  %p626_p12 = scmp.lt.s32.totalorder %s511_s8, %s511_s8 }
  0x27   :  { %p622_p11 = scmp.ne.s32.totalorder %s511_s8, %s621_s9  ;;  %p627_p13 = scmp.lt.s32.totalorder %s621_s9, %s621_s9 }
  0x28   :  { %v54_v10 = vand.u32 2147483647, %v702_v7  ;;  %v57_v11 = vand.u32 2139095040, %v702_v7  ;;  %v157_v12 = vand.u32 2147483647, %v704_v8  ;;  %v160_v13 = vand.u32 2139095040, %v704_v8 }
  0x29   :  { %v263_v19 = vand.u32 2139095040, %v706_v9  ;;  %v260_v34 = vand.u32 2147483647, %v706_v9  ;;  %vm56_vm13 = vcmp.lt.s32.totalorder %v702_v7, 0  ;;  %p628_p0 = por %p627_p13, %p626_p12 }
  0x2a   :  { %v58_v15 = vshrl.u32 %v57_v11, 23  ;;  %v61_v16 = vand.u32 8388607, %v54_v10  ;;  %v161_v17 = vshrl.u32 %v160_v13, 23  ;;  %v164_v18 = vand.u32 8388607, %v157_v12 }
  0x2b   :  { %v264_v23 = vshrl.u32 %v263_v19, 23  ;;  %p629_p1 = pnand %p628_p0, %p622_p11 }
  0x2c   :  { %v526_v20 = vadd.s32 4294967169, %v58_v15  ;;  %v530_v22 = vadd.s32 4294967169, %v161_v17  ;;  %v62_v25 = vor.u32 8388608, %v61_v16  ;;  %v165_v26 = vor.u32 8388608, %v164_v18 }
  0x2d   :  { %v534_v28 = vadd.s32 4294967169, %v264_v23 }
  0x2e   :  { %v64_v24 = vadd.s32 1, %v526_v20  ;;  %v167_v27 = vadd.s32 1, %v530_v22  ;;  %v720_v35 = vshll.u32 %v62_v25, 8  ;;  %v722_v37 = vshll.u32 %v165_v26, 8 }
  0x2f   :  { %v724_v38 = vadd.s32 1, %v534_v28 }
  0x30   :  { %vm65_vm0 = vcmp.gt.s32.totalorder %v64_v24, 0  ;;  %vm168_vm1 = vcmp.gt.s32.totalorder %v167_v27, 0 }
  0x31   :  { %v66_v30 = vsel %vm65_vm0, %v64_v24, 0  ;;  %v169_v33 = vsel %vm168_vm1, %v167_v27, 0  ;;  %vm271_vm6 = vcmp.gt.s32.totalorder %v724_v38, 0 }
  0x32   :  { %v67_v31 = vshrl.u32 %v66_v30, 5  ;;  %v68_v32 = vand.u32 31, %v66_v30  ;;  %v171_v36 = vand.u32 31, %v169_v33  ;;  %v731_v50 = vshrl.u32 %v169_v33, 5 }
  0x34   :  { %v69_v39 = vsub.s32 32, %v68_v32  ;;  %v71_v41 = vshll.u32 %v653_v40, %v68_v32  ;;  %v74_v43 = vshll.u32 %v654_v42, %v68_v32  ;;  %v77_v45 = vshll.u32 %v655_v44, %v68_v32 }
  0x35   :  { %v80_v47 = vshll.u32 %v656_v46, %v68_v32  ;;  %v83_v49 = vshll.u32 %v657_v48, %v68_v32  ;;  %vm86_vm2 = vcmp.lt.s32.totalorder %v67_v31, 1  ;;  %vm87_vm3 = vcmp.lt.s32.totalorder %v67_v31, 2 }
  0x36   :  { %v70_v51 = vshrl.u32 %v653_v40, %v69_v39  ;;  %v72_v52 = vshrl.u32 %v654_v42, %v69_v39  ;;  %v75_v53 = vshrl.u32 %v655_v44, %v69_v39  ;;  %v78_v54 = vshrl.u32 %v656_v46, %v69_v39 }
  0x37   :  { %v81_v55 = vshrl.u32 %v657_v48, %v69_v39  ;;  %v84_v57 = vshrl.u32 %v658_v56, %v69_v39  ;;  %vm89_vm4 = vcmp.lt.s32.totalorder %v67_v31, 4  ;;  %v172_v61 = vsub.s32 32, %v171_v36 }
  0x38   :  { %v73_v58 = vor.u32 %v72_v52, %v71_v41  ;;  %v76_v59 = vor.u32 %v75_v53, %v74_v43  ;;  %v79_v60 = vor.u32 %v78_v54, %v77_v45  ;;  %vm88_vm5 = vcmp.lt.s32.totalorder %v67_v31, 3 }
  0x39   :  { %v82_v62 = vor.u32 %v81_v55, %v80_v47  ;;  %v85_v63 = vor.u32 %v84_v57, %v83_v49  ;;  %v174_v0 = vshll.u32 %v653_v40, %v171_v36  ;;  %v177_v13 = vshll.u32 %v654_v42, %v171_v36 }
  0x3a   :  { %v90_v1 = vsel %vm86_vm2, %v70_v51, %v73_v58  ;;  %v91_v2 = vsel %vm89_vm4, %v79_v60, 2102212464  ;;  %v94_v3 = vsel %vm86_vm2, %v73_v58, %v76_v59  ;;  %v98_v4 = vsel %vm86_vm2, %v76_v59, %v79_v60 }
  0x3b   :  { %v92_v5 = vsel %vm88_vm5, %v76_v59, %v91_v2  ;;  %v95_v6 = vsel %vm89_vm4, %v82_v62, 920167782  ;;  %v99_v11 = vsel %vm89_vm4, %v85_v63, 1326507024  ;;  %v173_v16 = vshrl.u32 %v653_v40, %v172_v61 }
  0x3c   :  { %v96_v14 = vsel %vm88_vm5, %v79_v60, %v95_v6  ;;  %v100_v15 = vsel %vm88_vm5, %v82_v62, %v99_v11  ;;  %v175_v17 = vshrl.u32 %v654_v42, %v172_v61  ;;  %v93_v18 = vsel %vm87_vm3, %v90_v1, %v92_v5 }
  0x3d   :  { %v97_v19 = vsel %vm87_vm3, %v94_v3, %v96_v14  ;;  %v101_v20 = vsel %vm87_vm3, %v98_v4, %v100_v15  ;;  %v178_v21 = vshrl.u32 %v655_v44, %v172_v61  ;;  %v180_v28 = vshll.u32 %v655_v44, %v171_v36 }
  0x3e   :  { %v752_v22 = vmul.u32.u64.low %v720_v35, %v101_v20  ;;  %v753_v23 = vmul.u32.u64.high %v720_v35, %v101_v20, %v752_v22  ;;  %v756_v24 = vmul.u32.u64.low %v720_v35, %v97_v19  ;;  %v757_v25 = vmul.u32.u64.high %v720_v35, %v97_v19, %v756_v24 }
  0x3f   :  { %v176_v26 = vor.u32 %v175_v17, %v174_v0  ;;  %v179_v27 = vor.u32 %v178_v21, %v177_v13  ;;  %v181_v30 = vshrl.u32 %v656_v46, %v172_v61  ;;  %v183_v31 = vshll.u32 %v656_v46, %v171_v36 }
  0x40   :  { %v184_v32 = vshrl.u32 %v657_v48, %v172_v61  ;;  %v186_v33 = vshll.u32 %v657_v48, %v171_v36  ;;  %v187_v39 = vshrl.u32 %v658_v56, %v172_v61  ;;  %v109_v41 = vmul.u32 %v720_v35, %v93_v18 }
  0x41   :  { %v182_v43 = vor.u32 %v181_v30, %v180_v28  ;;  %vm189_vm7 = vcmp.lt.s32.totalorder %v731_v50, 1  ;;  %vm190_vm8 = vcmp.lt.s32.totalorder %v731_v50, 2  ;;  %vm111_vm9 = vc.u32 %v753_v23, %v756_v24 }
  0x42   :  { %v112_v45 = vadd.s32 1, %v757_v25  ;;  %v185_v47 = vor.u32 %v184_v32, %v183_v31  ;;  %vm191_vm10 = vcmp.lt.s32.totalorder %v731_v50, 3  ;;  %v188_v49 = vor.u32 %v187_v39, %v186_v33 }
  0x43   :  { %vm192_vm11 = vcmp.lt.s32.totalorder %v731_v50, 4  ;;  %v193_v36 = vsel %vm189_vm7, %v173_v16, %v176_v26  ;;  %v197_v51 = vsel %vm189_vm7, %v176_v26, %v179_v27  ;;  %v201_v54 = vsel %vm189_vm7, %v179_v27, %v182_v43 }
  0x44   :  { %v113_v35 = vsel %vm111_vm9, %v112_v45, %v757_v25  ;;  %v194_v52 = vsel %vm192_vm11, %v182_v43, 2102212464  ;;  %v198_v53 = vsel %vm192_vm11, %v185_v47, 920167782  ;;  %v202_v59 = vsel %vm192_vm11, %v188_v49, 1326507024 }
  0x45   :  { %v114_v55 = vadd.s32 %v113_v35, %v109_v41  ;;  %v195_v57 = vsel %vm191_vm10, %v179_v27, %v194_v52  ;;  %v199_v58 = vsel %vm191_vm10, %v182_v43, %v198_v53  ;;  %v203_v62 = vsel %vm191_vm10, %v185_v47, %v202_v59 }
  0x46   :  { %v196_v60 = vsel %vm190_vm8, %v193_v36, %v195_v57  ;;  %v200_v61 = vsel %vm190_vm8, %v197_v51, %v199_v58  ;;  %v272_v63 = vsel %vm271_vm6, %v724_v38, 0  ;;  %v204_v1 = vsel %vm190_vm8, %v201_v54, %v203_v62 }
  0x47   :  { %v115_v0 = vadd.s32 536870912, %v114_v55  ;;  %v785_v2 = vmul.u32.u64.low %v722_v37, %v200_v61  ;;  %v786_v3 = vmul.u32.u64.high %v722_v37, %v200_v61, %v785_v2  ;;  %v267_v6 = vand.u32 8388607, %v260_v34 }
  0x48   :  { %v790_v4 = vmul.u32.u64.low %v722_v37, %v204_v1  ;;  %v791_v5 = vmul.u32.u64.high %v722_v37, %v204_v1, %v790_v4  ;;  %v274_v13 = vand.u32 31, %v272_v63  ;;  %v366_v38 = vand.u32 2139095040, %v717_v29 }
  0x49   :  { %v795_v11 = vshrl.u32 %v115_v0, 30  ;;  %v212_v50 = vmul.u32 %v722_v37, %v196_v60  ;;  %v215_v15 = vadd.s32 1, %v786_v3  ;;  %v268_v17 = vor.u32 8388608, %v267_v6 }
  0x4a   :  { %v275_v16 = vsub.s32 32, %v274_v13  ;;  %vm214_vm12 = vc.u32 %v791_v5, %v785_v2  ;;  %v273_v20 = vshrl.u32 %v272_v63, 5  ;;  %v367_v21 = vshrl.u32 %v366_v38, 23 }
  0x4b   :  { %v117_v14 = vshll.u32 %v795_v11, 30  ;;  %v216_v19 = vsel %vm214_vm12, %v215_v15, %v786_v3  ;;  %v277_v25 = vshll.u32 %v653_v40, %v274_v13  ;;  %v280_v26 = vshll.u32 %v654_v42, %v274_v13 }
  0x4c   :  { %v217_v22 = vadd.s32 %v216_v19, %v212_v50  ;;  %v278_v37 = vshrl.u32 %v654_v42, %v275_v16  ;;  %v281_v28 = vshrl.u32 %v655_v44, %v275_v16  ;;  %v283_v30 = vshll.u32 %v655_v44, %v274_v13 }
  0x4d   :  { %v803_v18 = vsub.s32 %v114_v55, %v117_v14  ;;  %v284_v31 = vshrl.u32 %v656_v46, %v275_v16  ;;  %v110_v32 = vadd.s32 %v756_v24, %v753_v23  ;;  %v286_v39 = vshll.u32 %v656_v46, %v274_v13 }
  0x4e   :  { %v218_v33 = vadd.s32 536870912, %v217_v22  ;;  %v816_v41 = vshll.u32 %v268_v17, 8  ;;  %v276_v45 = vshrl.u32 %v653_v40, %v275_v16  ;;  %vm295_vm14 = vcmp.lt.s32.totalorder %v273_v20, 4 }
  0x4f   :  { %v120_v27 = vsub.s32 0, %v803_v18  ;;  %v538_v47 = vadd.s32 4294967169, %v367_v21  ;;  %v279_v36 = vor.u32 %v278_v37, %v277_v25  ;;  %v287_v51 = vshrl.u32 %v657_v48, %v275_v16 }
  0x50   :  { %v821_v49 = vshrl.u32 %v218_v33, 30  ;;  %v289_v23 = vshll.u32 %v657_v48, %v274_v13  ;;  %v282_v35 = vor.u32 %v281_v28, %v280_v26  ;;  %v285_v52 = vor.u32 %v284_v31, %v283_v30 }
  0x51   :  { %v527_v43 = vmin.u32 %v120_v27, %v803_v18  ;;  %v290_v53 = vshrl.u32 %v658_v56, %v275_v16  ;;  %v288_v55 = vor.u32 %v287_v51, %v286_v39  ;;  %vm292_vm15 = vcmp.lt.s32.totalorder %v273_v20, 1 }
  0x52   :  { %v220_v54 = vshll.u32 %v821_v49, 30  ;;  %vm294_vm0 = vcmp.lt.s32.totalorder %v273_v20, 3  ;;  %vm293_vm1 = vcmp.lt.s32.totalorder %v273_v20, 2  ;;  %v297_v59 = vsel %vm295_vm14, %v285_v52, 2102212464 }
  0x53   :  { %v122_v24 = vclz %v527_v43  ;;  %v291_v58 = vor.u32 %v290_v53, %v289_v23  ;;  %v140_v60 = vsub.s32 4, %v795_v11  ;;  %v296_v62 = vsel %vm292_vm15, %v276_v45, %v279_v36 }
  0x54   :  { %v829_v61 = vsub.s32 %v217_v22, %v220_v54  ;;  %v301_v63 = vsel %vm295_vm14, %v288_v55, 920167782  ;;  %v300_v0 = vsel %vm292_vm15, %v279_v36, %v282_v35  ;;  %v298_v13 = vsel %vm294_vm0, %v282_v35, %v297_v59 }
  0x55   :  { %v528_v57 = vadd.s32 4294967294, %v122_v24  ;;  %v302_v1 = vsel %vm294_vm0, %v285_v52, %v301_v63  ;;  %v305_v3 = vsel %vm295_vm14, %v291_v58, 1326507024  ;;  %v304_v38 = vsel %vm292_vm15, %v282_v35, %v285_v52 }
  0x56   :  { %v223_v6 = vsub.s32 0, %v829_v61  ;;  %v306_v16 = vsel %vm294_vm0, %v288_v55, %v305_v3  ;;  %v141_v17 = vsel %vm56_vm13, %v140_v60, %v795_v11  ;;  %v303_v21 = vsel %vm293_vm1, %v300_v0, %v302_v1 }
  0x57   :  { %vm529_vm2 = vcmp.lt.s32.totalorder %v528_v57, 0  ;;  %v363_v22 = vand.u32 2147483647, %v717_v29  ;;  %v299_v26 = vsel %vm293_vm1, %v296_v62, %v298_v13  ;;  %v307_v27 = vsel %vm293_vm1, %v304_v38, %v306_v16 }
  0x58   :  { %v125_v4 = vsel %vm529_vm2, 0, %v528_v57  ;;  %v531_v19 = vmin.u32 %v223_v6, %v829_v61  ;;  %v850_v28 = vmul.u32.u64.low %v816_v41, %v307_v27  ;;  %v851_v30 = vmul.u32.u64.high %v816_v41, %v307_v27, %v850_v28 }
  0x59   :  { %v126_v50 = vsub.s32 32, %v125_v4  ;;  %v127_v14 = vshll.u32 %v803_v18, %v125_v4  ;;  %v130_v15 = vsub.s32 4294967266, %v125_v4  ;;  %v373_v31 = vadd.s32 1, %v538_v47 }
  0x5a   :  { %v225_v18 = vclz %v531_v19  ;;  %v854_v39 = vmul.u32.u64.low %v816_v41, %v303_v21  ;;  %v855_v43 = vmul.u32.u64.high %v816_v41, %v303_v21, %v854_v39  ;;  %vm860_vm3 = vcmp.le.f32.partialorder %v54_v10, 0.7853982 }
  0x5b   :  { %v128_v25 = vshrl.u32 %v110_v32, %v126_v50  ;;  %v131_v37 = vadd.s32 127, %v130_v15  ;;  %v866_v45 = vand.u32 8388607, %v363_v22  ;;  %vm374_vm4 = vcmp.gt.s32.totalorder %v373_v31, 0 }
  0x5c   :  { %v532_v20 = vadd.s32 4294967294, %v225_v18  ;;  %v213_v51 = vadd.s32 %v785_v2, %v791_v5  ;;  %v375_v23 = vsel %vm374_vm4, %v373_v31, 0  ;;  %v143_v24 = vsel %vm860_vm3, 0, %v141_v17 }
  0x5d   :  { %v129_v33 = vor.u32 %v128_v25, %v127_v14  ;;  %v132_v11 = vshll.u32 %v131_v37, 23  ;;  %v315_v10 = vmul.u32 %v816_v41, %v299_v26  ;;  %vm317_vm6 = vc.u32 %v851_v30, %v854_v39 }
  0x5e   :  { %vm533_vm5 = vcmp.lt.s32.totalorder %v532_v20, 0  ;;  %v318_v53 = vadd.s32 1, %v855_v43  ;;  %v377_v54 = vand.u32 31, %v375_v23  ;;  %v371_v2 = vor.u32 8388608, %v866_v45 }
  0x5f   :  { %v133_v47 = vor.u32 4788187, %v132_v11  ;;  %v136_v36 = vcvt.s32.f32 %v129_v33  ;;  %v228_v52 = vsel %vm533_vm5, 0, %v532_v20  ;;  %v878_v59 = vand.u32 3, %v143_v24 }
  0x60   :  { %v229_v55 = vsub.s32 32, %v228_v52  ;;  %v230_v57 = vshll.u32 %v829_v61, %v228_v52  ;;  %v233_v58 = vsub.s32 4294967266, %v228_v52  ;;  %v319_v60 = vsel %vm317_vm6, %v318_v53, %v855_v43 }
  0x61   :  { %v134_v35 = vand.u32 2147483647, %v133_v47  ;;  %v378_v41 = vsub.s32 32, %v377_v54  ;;  %vm159_vm7 = vcmp.lt.s32.totalorder %v704_v8, 0  ;;  %v243_v0 = vsub.s32 4, %v821_v49 }
  0x62   :  { %v231_v62 = vshrl.u32 %v213_v51, %v229_v55  ;;  %v234_v63 = vadd.s32 127, %v233_v58  ;;  %v320_v1 = vadd.s32 %v319_v60, %v315_v10  ;;  %v883_v4 = vshrl.u32 %v375_v23, 5 }
  0x63   :  { %v137_v5 = vmul.f32 %v136_v36, %v134_v35  ;;  %v380_v61 = vshll.u32 %v653_v40, %v377_v54  ;;  %v383_v6 = vshll.u32 %v654_v42, %v377_v54  ;;  %vm889_vm8 = vcmp.le.f32.partialorder %v157_v12, 0.7853982 }
  0x64   :  { %v232_v38 = vor.u32 %v231_v62, %v230_v57  ;;  %v235_v50 = vshll.u32 %v234_v63, 23  ;;  %v321_v14 = vadd.s32 536870912, %v320_v1  ;;  %v381_v15 = vshrl.u32 %v654_v42, %v378_v41 }
  0x65   :  { %v138_v3 = vxor.u32 2147483648, %v137_v5  ;;  %v384_v17 = vshrl.u32 %v655_v44, %v378_v41  ;;  %v386_v19 = vshll.u32 %v655_v44, %v377_v54  ;;  %v387_v21 = vshrl.u32 %v656_v46, %v378_v41 }
  0x66   :  { %v236_v25 = vor.u32 4788187, %v235_v50  ;;  %v239_v37 = vcvt.s32.f32 %v232_v38  ;;  %v902_v26 = vshrl.u32 %v321_v14, 30  ;;  %v389_v42 = vshll.u32 %v656_v46, %v377_v54 }
  0x67   :  { %v139_v16 = vsel %vm56_vm13, %v138_v3, %v137_v5  ;;  %v390_v27 = vshrl.u32 %v657_v48, %v378_v41  ;;  %vm395_vm9 = vcmp.lt.s32.totalorder %v883_v4, 1  ;;  %v382_v28 = vor.u32 %v381_v15, %v380_v61 }
  0x68   :  { %v142_v12 = vsel %vm860_vm3, %v702_v7, %v139_v16  ;;  %v237_v18 = vand.u32 2147483647, %v236_v25  ;;  %v323_v44 = vshll.u32 %v902_v26, 30  ;;  %v385_v31 = vor.u32 %v384_v17, %v383_v6 }
  0x69   :  { %573 = vcosq.f32 %v142_v12  ;;  %v391_v33 = vor.u32 %v390_v27, %v389_v42  ;;  %v392_v11 = vshll.u32 %v657_v48, %v377_v54  ;;  %v393_v43 = vshrl.u32 %v658_v56, %v378_v41 }
  0x6a   :  { %575 = vsinq.f32 %v142_v12  ;;  %vm149_vm10 = vcmp.eq.s32.totalorder %v878_v59, 0  ;;  %v240_v32 = vmul.f32 %v239_v37, %v237_v18  ;;  %v911_v20 = vsub.s32 %v320_v1, %v323_v44 }
  0x6b   :  { %v379_v46 = vshrl.u32 %v653_v40, %v378_v41  ;;  %v388_v45 = vor.u32 %v387_v21, %v386_v19  ;;  %vm152_vm11 = vcmp.eq.s32.totalorder %v878_v59, 2  ;;  %v244_v47 = vsel %vm159_vm7, %v243_v0, %v821_v49 }
  0x6c   :  { %vm397_vm12 = vcmp.lt.s32.totalorder %v883_v4, 3  ;;  %vm398_vm13 = vcmp.lt.s32.totalorder %v883_v4, 4  ;;  %vm146_vm14 = vweird.f32 %v702_v7  ;;  %v241_v48 = vxor.u32 2147483648, %v240_v32 }
  0x6d   :  { %v326_v56 = vsub.s32 0, %v911_v20  ;;  %v394_v36 = vor.u32 %v393_v43, %v392_v11  ;;  %v400_v40 = vsel %vm398_vm13, %v388_v45, 2102212464  ;;  %vm396_vm15 = vcmp.lt.s32.totalorder %v883_v4, 2 }
  0x6e   :  { %v403_v51 = vsel %vm395_vm9, %v382_v28, %v385_v31  ;;  %v404_v49 = vsel %vm398_vm13, %v391_v33, 920167782  ;;  %v411_v23 = vshll.u32 %v371_v2, 8  ;;  %v242_v24 = vsel %vm159_vm7, %v241_v48, %v240_v32 }
  0x6f   :  { %v246_v10 = vsel %vm889_vm8, 0, %v244_v47  ;;  %v535_v35 = vmin.u32 %v326_v56, %v911_v20  ;;  %v399_v52 = vsel %vm395_vm9, %v379_v46, %v382_v28  ;;  %v245_v53 = vsel %vm889_vm8, %v704_v8, %v242_v24 }
  0x70   :  { %v401_v54 = vsel %vm397_vm12, %v385_v31, %v400_v40  ;;  %v405_v55 = vsel %vm397_vm12, %v388_v45, %v404_v49  ;;  %v407_v57 = vsel %vm395_vm9, %v385_v31, %v388_v45  ;;  %577 = vcosq.f32 %v245_v53 }
  0x71   :  { %v328_v58 = vclz %v535_v35  ;;  %v406_v2 = vsel %vm396_vm15, %v403_v51, %v405_v55  ;;  %v408_v5 = vsel %vm398_vm13, %v394_v36, 1326507024  ;;  %579 = vsinq.f32 %v245_v53 }
  0x72   :  { %v409_v41 = vsel %vm397_vm12, %v391_v33, %v408_v5  ;;  %v953_v62 = vmul.u32.u64.low %v411_v23, %v406_v2  ;;  %v954_v63 = vmul.u32.u64.high %v411_v23, %v406_v2, %v953_v62  ;;  %v402_v61 = vsel %vm396_vm15, %v399_v52, %v401_v54 }
  0x73   :  { %v574_v60 = vpop.eup %573  ;;  %v536_v3 = vadd.s32 4294967294, %v328_v58  ;;  %v410_v6 = vsel %vm396_vm15, %v407_v57, %v409_v41  ;;  %vm148_vm0 = vcmp.lt.s32.totalorder %v878_v59, 2  ;;  %v250_v15 = vand.u32 3, %v246_v10 }
  0x74   :  { %v576_v0 = vpop.eup %575  ;;  %v153_v1 = vxor.u32 2147483648, %v574_v60  ;;  %v964_v38 = vmul.u32.u64.low %v411_v23, %v410_v6  ;;  %v965_v50 = vmul.u32.u64.high %v411_v23, %v410_v6, %v964_v38  ;;  %v316_v16 = vadd.s32 %v854_v39, %v851_v30 }
  0x75   :  { %v150_v13 = vxor.u32 2147483648, %v576_v0  ;;  %vm537_vm1 = vcmp.lt.s32.totalorder %v536_v3, 0  ;;  %v418_v19 = vmul.u32 %v411_v23, %v402_v61  ;;  %v421_v21 = vadd.s32 1, %v954_v63 }
  0x76   :  { %v154_v14 = vsel %vm152_vm11, %v153_v1, %v576_v0  ;;  %v331_v17 = vsel %vm537_vm1, 0, %v536_v3  ;;  %vm420_vm2 = vc.u32 %v965_v50, %v953_v62  ;;  %v980_v30 = vstv %s936_s1 }
  0x77   :  { %v151_v4 = vsel %vm149_vm10, %v574_v60, %v150_v13  ;;  %v332_v25 = vsub.s32 32, %v331_v17  ;;  %v333_v37 = vshll.u32 %v911_v20, %v331_v17  ;;  %v336_v42 = vsub.s32 4294967266, %v331_v17 }
  0x78   :  { %v155_v12 = vsel %vm148_vm0, %v151_v4, %v154_v14  ;;  %v422_v18 = vsel %vm420_vm2, %v421_v21, %v954_v63  ;;  %vm251_vm3 = vcmp.lt.s32.totalorder %v250_v15, 2  ;;  %vm252_vm4 = vcmp.eq.s32.totalorder %v250_v15, 0 }
  0x79   :  { %v156_v27 = vsel %vm146_vm14, nan, %v155_v12  ;;  %v334_v39 = vshrl.u32 %v316_v16, %v332_v25  ;;  %v337_v59 = vadd.s32 127, %v336_v42  ;;  %v423_v28 = vadd.s32 %v422_v18, %v418_v19 }
  0x7a   :  { %v466_v44 = vmul.f32 2.0, %v156_v27  ;;  %v578_v31 = vpop.eup %577  ;;  %vm255_vm5 = vcmp.eq.s32.totalorder %v250_v15, 2  ;;  %v479_v46 = vmul.f32 %v980_v30, %v156_v27  ;;  %v987_v45 = vstv %s961_s5 }
  0x7b   :  { %v335_v7 = vor.u32 %v334_v39, %v333_v37  ;;  %v338_v33 = vshll.u32 %v337_v59, 23  ;;  %v580_v43 = vpop.eup %579  ;;  %v256_v32 = vxor.u32 2147483648, %v578_v31  ;;  %v424_v20 = vadd.s32 536870912, %v423_v28 }
  0x7c   :  { %v470_v11 = vmul.f32 %v466_v44, %v156_v27  ;;  %v253_v47 = vxor.u32 2147483648, %v580_v43  ;;  %vm249_vm6 = vweird.f32 %v704_v8  ;;  %vm262_vm7 = vcmp.lt.s32.totalorder %v706_v9, 0 }
  0x7d   :  { %v339_v48 = vor.u32 4788187, %v338_v33  ;;  %v342_v56 = vcvt.s32.f32 %v335_v7  ;;  %v257_v40 = vsel %vm255_vm5, %v256_v32, %v580_v43  ;;  %v990_v51 = vshrl.u32 %v424_v20, 30 }
  0x7e   :  { %v542_v36 = vadd.f32 -1.0, %v470_v11  ;;  %v254_v49 = vsel %vm252_vm4, %v578_v31, %v253_v47  ;;  %v998_v8 = vstv %s983_s6  ;;  %vm1002_vm8 = vcmp.le.f32.partialorder %v260_v34, 0.7853982 }
  0x7f   :  { %v340_v23 = vand.u32 2147483647, %v339_v48  ;;  %v258_v10 = vsel %vm251_vm3, %v254_v49, %v257_v40  ;;  %v426_v35 = vshll.u32 %v990_v51, 30  ;;  %v346_v5 = vsub.s32 4, %v902_v26 }
  0x80   :  { %v484_v24 = vadd.f32 %v542_v36, %v987_v45  ;;  %v259_v52 = vsel %vm249_vm6, nan, %v258_v10  ;;  %v419_v17 = vadd.s32 %v953_v62, %v965_v50  ;;  %vm352_vm13 = vweird.f32 %v706_v9 }
  0x81   :  { %v343_v53 = vmul.f32 %v342_v56, %v340_v23  ;;  %v427_v55 = vsub.s32 %v423_v28, %v426_v35  ;;  %v467_v57 = vmul.f32 2.0, %v259_v52  ;;  %v347_v6 = vsel %vm262_vm7, %v346_v5, %v902_v26 }
  0x82   :  { %v488_v54 = vmul.f32 %v484_v24, %v479_v46  ;;  %v480_v13 = vmul.f32 %v980_v30, %v259_v52  ;;  %v349_v15 = vsel %vm1002_vm8, 0, %v347_v6  ;;  %vm365_vm14 = vcmp.lt.s32.totalorder %v717_v29, 0 }
  0x83   :  { %v344_v2 = vxor.u32 2147483648, %v343_v53  ;;  %v429_v41 = vsub.s32 0, %v427_v55  ;;  %v471_v63 = vmul.f32 %v467_v57, %v259_v52  ;;  %v353_v19 = vand.u32 3, %v349_v15 }
  0x84   :  { %v492_v60 = vand.u32 2147483647, %v488_v54  ;;  %vm364_vm15 = vcmp.le.f32.partialorder %v363_v22, 0.7853982  ;;  %v449_v56 = vsub.s32 4, %v990_v51  ;;  %vm455_vm3 = vweird.f32 %v717_v29 }
  0x85   :  { %v345_v0 = vsel %vm262_vm7, %v344_v2, %v343_v53  ;;  %v539_v61 = vmin.u32 %v429_v41, %v427_v55  ;;  %v543_v34 = vadd.f32 -1.0, %v471_v63  ;;  %vm358_vm10 = vcmp.eq.s32.totalorder %v353_v19, 2 }
  0x86   :  { %v497_v1 = vadd.f32 %v998_v8, %v492_v60  ;;  %v348_v3 = vsel %vm1002_vm8, %v706_v9, %v345_v0  ;;  %vm355_vm11 = vcmp.eq.s32.totalorder %v353_v19, 0  ;;  %vm354_vm12 = vcmp.lt.s32.totalorder %v353_v19, 2 }
  0x87   :  { %581 = vcosq.f32 %v348_v3  ;;  %v431_v38 = vclz %v539_v61  ;;  %v485_v14 = vadd.f32 %v543_v34, %v987_v45  ;;  %v450_v24 = vsel %vm365_vm14, %v449_v56, %v990_v51 }
  0x88   :  { %501 = vst [vmem:[#allocation7] sm:$0xff] %v497_v1  ;;  %583 = vsinq.f32 %v348_v3  ;;  %v452_v52 = vsel %vm364_vm15, 0, %v450_v24 }
  0x89   :  { %v540_v16 = vadd.s32 4294967294, %v431_v38  ;;  %v489_v4 = vmul.f32 %v485_v14, %v480_v13  ;;  %v456_v22 = vand.u32 3, %v452_v52 }
  0x8b   :  { %vm541_vm9 = vcmp.lt.s32.totalorder %v540_v16, 0  ;;  %v493_v21 = vand.u32 2147483647, %v489_v4  ;;  %vm461_vm0 = vcmp.eq.s32.totalorder %v456_v22, 2  ;;  %vm458_vm1 = vcmp.eq.s32.totalorder %v456_v22, 0 }
  0x8c   :  { %v434_v26 = vsel %vm541_vm9, 0, %v540_v16  ;;  %vm457_vm2 = vcmp.lt.s32.totalorder %v456_v22, 2 }
  0x8d   :  { %v435_v12 = vsub.s32 32, %v434_v26  ;;  %v436_v25 = vshll.u32 %v427_v55, %v434_v26  ;;  %v439_v37 = vsub.s32 4294967266, %v434_v26  ;;  %v498_v42 = vadd.f32 %v998_v8, %v493_v21 }
  0x8f   :  { %v437_v27 = vshrl.u32 %v419_v17, %v435_v12  ;;  %v440_v39 = vadd.s32 127, %v439_v37  ;;  %502 = vst [vmem:[#allocation7 + $0x8] sm:$0xff] %v498_v42 }
  0x91   :  { %v582_v59 = vpop.eup %581  ;;  %v438_v28 = vor.u32 %v437_v27, %v436_v25  ;;  %v441_v31 = vshll.u32 %v440_v39, 23 }
  0x92   :  { %v584_v18 = vpop.eup %583  ;;  %v359_v44 = vxor.u32 2147483648, %v582_v59 }
  0x93   :  { %v356_v62 = vxor.u32 2147483648, %v584_v18  ;;  %v442_v7 = vor.u32 4788187, %v441_v31  ;;  %v445_v33 = vcvt.s32.f32 %v438_v28 }
  0x94   :  { %v360_v50 = vsel %vm358_vm10, %v359_v44, %v584_v18 }
  0x95   :  { %v357_v11 = vsel %vm355_vm11, %v582_v59, %v356_v62  ;;  %v443_v32 = vand.u32 2147483647, %v442_v7 }
  0x96   :  { %v361_v43 = vsel %vm354_vm12, %v357_v11, %v360_v50 }
  0x97   :  { %v362_v20 = vsel %vm352_vm13, nan, %v361_v43  ;;  %v446_v46 = vmul.f32 %v445_v33, %v443_v32 }
  0x98   :  { %v468_v47 = vmul.f32 2.0, %v362_v20  ;;  %v481_v49 = vmul.f32 %v980_v30, %v362_v20 }
  0x99   :  { %v447_v48 = vxor.u32 2147483648, %v446_v46 }
  0x9a   :  { %v472_v36 = vmul.f32 %v468_v47, %v362_v20 }
  0x9b   :  { %v448_v40 = vsel %vm365_vm14, %v447_v48, %v446_v46 }
  0x9c   :  { %v544_v9 = vadd.f32 -1.0, %v472_v36  ;;  %v451_v23 = vsel %vm364_vm15, %v717_v29, %v448_v40 }
  0x9d   :  { %585 = vcosq.f32 %v451_v23 }
  0x9e   :  { %v486_v10 = vadd.f32 %v544_v9, %v987_v45  ;;  %587 = vsinq.f32 %v451_v23 }
  0xa0   :  { %v490_v35 = vmul.f32 %v486_v10, %v481_v49 }
  0xa2   :  { %v494_v53 = vand.u32 2147483647, %v490_v35 }
  0xa4   :  { %v499_v54 = vadd.f32 %v998_v8, %v494_v53 }
  0xa6   :  { %503 = vst [vmem:[#allocation7 + $0x10] sm:$0xff] %v499_v54 }
  0xa7   :  { %v586_v55 = vpop.eup %585 }
  0xa8   :  { %v588_v57 = vpop.eup %587  ;;  %v462_v58 = vxor.u32 2147483648, %v586_v55 }
  0xa9   :  { %v459_v2 = vxor.u32 2147483648, %v588_v57 }
  0xaa   :  { %v463_v51 = vsel %vm461_vm0, %v462_v58, %v588_v57 }
  0xab   :  { %v460_v5 = vsel %vm458_vm1, %v586_v55, %v459_v2 }
  0xac   :  { %v464_v60 = vsel %vm457_vm2, %v460_v5, %v463_v51 }
  0xad   :  { %v465_v41 = vsel %vm455_vm3, nan, %v464_v60 }
  0xae   :  { %v469_v63 = vmul.f32 2.0, %v465_v41  ;;  %v482_v3 = vmul.f32 %v980_v30, %v465_v41 }
  0xb0   :  { %v473_v0 = vmul.f32 %v469_v63, %v465_v41 }
  0xb2   :  { %v545_v1 = vadd.f32 -1.0, %v473_v0 }
  0xb4   :  { %v487_v61 = vadd.f32 %v545_v1, %v987_v45 }
  0xb6   :  { %v491_v6 = vmul.f32 %v487_v61, %v482_v3 }
  0xb8   :  { %v495_v34 = vand.u32 2147483647, %v491_v6 }
  0xba   :  { %v500_v13 = vadd.f32 %v998_v8, %v495_v34 }
  0xbc   :  { %504 = vst [vmem:[#allocation7 + $0x18] sm:$0xff] %v500_v13 }
  0xbd   :  { %632 = shalt.err (!%p629_p1)
}
  0xbe   :  { %s633_s12 = scalar_lea.hbm %s1050_s2, 512 }
  0xbf   :  { %p634_p2 = scmp.ne.s32.totalorder %s1050_s2, %s633_s12  ;;  %p637_p3 = scmp.lt.u32.totalorder %s633_s12, %s1050_s2 }
  0xc1   :  { %p639_p4 = pnand %p637_p3, %p634_p2 }
  0xc3   :  { %642 = shalt.err (!%p639_p4)
}
  0xc4   :  { %516 = dma.vmem_to_hbm [thread:$0]  %s511_s8, 512, %s1050_s2, [#allocation4], %s651_s0, %s651_s0, %s652_s29  }
  0xc5   :  { %647 = dma.done.wait [#allocation4], 512  }
  0xc6   :  { %648 = vsyncadd [#allocation4], 4294966784 }
  0xc7   :  { %520 = vsyncpa [#allocation3], 1 }
  0xc8   :  { %521 = vsyncpa [#allocation4], 1 }
  0xc9   :  { %522 = vsyncpa [#allocation5], 1 }

</bundles_post_ra>
